<compile_context>
chip_gen: v7x
topology: tpu7x:2x2x1
jax: 0.10.0
libtpu: 0.0.40
codegen_flags: <defaults>
</compile_context>

<pallas_src>
import functools
import math

import jax
import jax.numpy as jnp
from jax import lax
from jax.experimental import pallas as pl
from jax.experimental.pallas import tpu as pltpu


def _layer_norm(y, gamma, beta, eps=1e-5):
    mean = jnp.mean(y, axis=-1, keepdims=True)
    var = jnp.mean((y - mean) ** 2, axis=-1, keepdims=True)   # biased, like torch
    return (y - mean) * lax.rsqrt(var + eps) * gamma + beta


# Batched-matmul dimension numbers (batch dim leading).
_DN_BMM = (((2,), (1,)), ((0,), (0,)))      # (H,M,K) x (H,K,N) -> (H,M,N)
_DN_BMM_RT = (((2,), (2,)), ((0,), (0,)))   # (H,M,K) x (H,N,K) -> (H,M,N)


def encoder_kernel(xq_ref, xkv_ref,
                   wq_ref, bq_ref, wk_ref, bk_ref, wv_ref, bv_ref,
                   wo_ref, bo_ref,
                   w1_ref, b1_ref, w2_ref, b2_ref,
                   g1_ref, be1_ref, g2_ref, be2_ref,
                   o_ref, *, num_heads, d_k, d_v):
    f32 = jnp.float32
    bf16 = jnp.bfloat16
    H = num_heads

    x_q = xq_ref[0].astype(f32)          # (tq, D)  query rows / residual path
    x_kv = xkv_ref[0]                    # (S, D)   full sequence for K/V
    tq, D = x_q.shape
    S = x_kv.shape[0]

    bmm = functools.partial(lax.dot_general, preferred_element_type=f32)

    # Head-batched projections: broadcast x across heads once (no lane slices,
    # no transposes, no concatenate). bf16 MXU operands, f32 accumulation.
    xq_b = jnp.broadcast_to(x_q.astype(bf16)[None], (H, tq, D))
    xkv_b = jnp.broadcast_to(x_kv.astype(bf16)[None], (H, S, D))

    q = bmm(xq_b, wq_ref[...], dimension_numbers=_DN_BMM) + bq_ref[...]    # (H,tq,dk) f32
    k = bmm(xkv_b, wk_ref[...], dimension_numbers=_DN_BMM) + bk_ref[...]   # (H,S,dk)  f32
    v = bmm(xkv_b, wv_ref[...], dimension_numbers=_DN_BMM) + bv_ref[...]   # (H,S,dv)  f32

    q = (q * (1.0 / math.sqrt(d_k))).astype(bf16)   # fold 1/sqrt(dk) into q (cheaper than scores)
    k = k.astype(bf16)
    v = v.astype(bf16)

    # Attention with deferred softmax normalization.
    scores = bmm(q, k, dimension_numbers=_DN_BMM_RT)            # (H,tq,S) f32
    m = jnp.max(scores, axis=-1, keepdims=True)
    p = jnp.exp(scores - m)                                     # f32
    l = jnp.sum(p, axis=-1, keepdims=True)                      # (H,tq,1)

    o = bmm(p.astype(bf16), v, dimension_numbers=_DN_BMM)       # (H,tq,dv) f32
    o = o * pl.reciprocal(l, approx=True)                       # EUP reciprocal, post-PV

    # Output projection: per-head (dv,D) slabs, then sum over heads == concat+W_o.
    attn_h = bmm(o.astype(bf16), wo_ref[...], dimension_numbers=_DN_BMM)   # (H,tq,D)
    attn = jnp.sum(attn_h, axis=0) + bo_ref[...]                           # (tq,D) f32

    # Residual + LayerNorm 0 (f32).
    y = _layer_norm(x_q + attn, g1_ref[...], be1_ref[...])

    # Position-wise FFN (bf16 matmuls, f32 accumulation / elementwise).
    h1 = jnp.dot(y.astype(bf16), w1_ref[...], preferred_element_type=f32) + b1_ref[...]
    h1 = jnp.maximum(h1, 0.0)
    ffn = jnp.dot(h1.astype(bf16), w2_ref[...], preferred_element_type=f32) + b2_ref[...]

    # Residual + LayerNorm 1 (f32).
    out = _layer_norm(y + ffn, g2_ref[...], be2_ref[...])
    o_ref[0] = out.astype(o_ref.dtype)


def transformer_encoder_stack(x, params, *, num_heads, d_k, d_v, q_tile=None):
    B, S, D = x.shape
    H = num_heads
    d_ff = params["w1"].shape[-1]
    bf16, f32 = jnp.bfloat16, jnp.float32

    if q_tile is None:
        q_tile = S if S <= 256 else 256
    assert S % q_tile == 0 and (q_tile == S or q_tile % 8 == 0), "bad q_tile"
    n_q = S // q_tile

    # Head-major weight layouts (prepared once outside the kernel); bf16 matmul weights.
    wq = params["wq"].reshape(D, H, d_k).transpose(1, 0, 2).astype(bf16)   # (H,D,dk)
    wk = params["wk"].reshape(D, H, d_k).transpose(1, 0, 2).astype(bf16)
    wv = params["wv"].reshape(D, H, d_v).transpose(1, 0, 2).astype(bf16)
    wo = params["wo"].reshape(H, d_v, D).astype(bf16)                      # (H,dv,D)
    bq = params["bq"].reshape(H, 1, d_k).astype(f32)
    bk = params["bk"].reshape(H, 1, d_k).astype(f32)
    bv = params["bv"].reshape(H, 1, d_v).astype(f32)
    bo = params["bo"].reshape(1, D).astype(f32)
    w1 = params["w1"].astype(bf16)
    b1 = params["b1"].reshape(1, d_ff).astype(f32)
    w2 = params["w2"].astype(bf16)
    b2 = params["b2"].reshape(1, D).astype(f32)
    g1 = params["g1"].reshape(1, D).astype(f32)
    be1 = params["be1"].reshape(1, D).astype(f32)
    g2 = params["g2"].reshape(1, D).astype(f32)
    be2 = params["be2"].reshape(1, D).astype(f32)

    weight_list = [wq, bq, wk, bk, wv, bv, wo, bo, w1, b1, w2, b2, g1, be1, g2, be2]

    def const_spec(arr):
        n = arr.ndim
        return pl.BlockSpec(tuple(arr.shape), lambda b, qi, _n=n: (0,) * _n)

    in_specs = [
        pl.BlockSpec((1, q_tile, D), lambda b, qi: (b, qi, 0)),   # query / residual tile
        pl.BlockSpec((1, S, D), lambda b, qi: (b, 0, 0)),         # full sequence for K/V (constant per b)
    ] + [const_spec(w) for w in weight_list]

    out_specs = pl.BlockSpec((1, q_tile, D), lambda b, qi: (b, qi, 0))

    # Explicit VMEM budget derived from the chosen tiles (clamped for v7x's 64 MiB).
    itemsize = x.dtype.itemsize
    weight_bytes = sum(int(w.size) * w.dtype.itemsize for w in weight_list)
    act_bytes = 2 * ((q_tile + S) * D * itemsize) + 2 * (q_tile * D * itemsize)   # dbl-buffered x/out tiles
    interm_bytes = 4 * (3 * H * S * max(d_k, d_v) + 2 * H * q_tile * S
                        + H * q_tile * (d_v + D) + q_tile * d_ff + 4 * q_tile * D)
    vmem_limit = int(min(max(2 * weight_bytes + act_bytes + 2 * interm_bytes + (4 << 20),
                             16 << 20), 64 << 20))

    flops = int(2 * B * S * D * H * (2 * d_k + d_v)      # QKV projections
                + 2 * B * H * S * S * (d_k + d_v)        # scores + PV
                + 2 * B * S * H * d_v * D                # output projection
                + 4 * B * S * D * d_ff)                  # FFN
    cost = pl.CostEstimate(
        flops=flops,
        transcendentals=int(B * H * S * S),
        bytes_accessed=int(2 * x.size * itemsize + weight_bytes))

    kernel = functools.partial(encoder_kernel, num_heads=H, d_k=d_k, d_v=d_v)

    return pl.pallas_call(
        kernel,
        out_shape=jax.ShapeDtypeStruct((B, S, D), x.dtype),
        grid=(B, n_q),
        in_specs=in_specs,
        out_specs=out_specs,
        compiler_params=pltpu.CompilerParams(
            dimension_semantics=("parallel", "parallel"),
            vmem_limit_bytes=vmem_limit),
        cost_estimate=cost,
    )(x, x, *weight_list)


def _reference(x, p, num_heads, d_k, d_v):
    """Pure-JAX f32 reference (same math) for a sanity check."""
    q = x @ p["wq"] + p["bq"]
    k = x @ p["wk"] + p["bk"]
    v = x @ p["wv"] + p["bv"]
    B, S, _ = x.shape
    qh = q.reshape(B, S, num_heads, d_k).transpose(0, 2, 1, 3)
    kh = k.reshape(B, S, num_heads, d_k).transpose(0, 2, 1, 3)
    vh = v.reshape(B, S, num_heads, d_v).transpose(0, 2, 1, 3)
    s = jnp.einsum("bhqd,bhkd->bhqk", qh, kh) / math.sqrt(d_k)
    a = jax.nn.softmax(s, axis=-1)
    o = jnp.einsum("bhqk,bhkd->bhqd", a, vh).transpose(0, 2, 1, 3).reshape(B, S, -1)
    attn = o @ p["wo"] + p["bo"]

    def ln(y, g, b, eps=1e-5):
        m = jnp.mean(y, axis=-1, keepdims=True)
        var = jnp.mean((y - m) ** 2, axis=-1, keepdims=True)
        return (y - m) * lax.rsqrt(var + eps) * g + b

    y = ln(x + attn, p["g1"], p["be1"])
    ffn = jnp.maximum(y @ p["w1"] + p["b1"], 0.0) @ p["w2"] + p["b2"]
    return ln(y + ffn, p["g2"], p["be2"])


if __name__ == "__main__":
    B, S = 2, 8
    num_heads, d_model, d_k, d_v = 4, 32, 8, 8
    d_ff = 4 * d_model

    key = jax.random.PRNGKey(0)
    ks = jax.random.split(key, 8)

    x = jax.random.normal(ks[0], (B, S, d_model), jnp.float32)

    def w(k, shape, scale=0.1):
        return (scale * jax.random.normal(k, shape)).astype(jnp.float32)

    params = {
        "wq": w(ks[1], (d_model, num_heads * d_k)),
        "bq": jnp.zeros((1, num_heads * d_k), jnp.float32),
        "wk": w(ks[2], (d_model, num_heads * d_k)),
        "bk": jnp.zeros((1, num_heads * d_k), jnp.float32),
        "wv": w(ks[3], (d_model, num_heads * d_v)),
        "bv": jnp.zeros((1, num_heads * d_v), jnp.float32),
        "wo": w(ks[4], (num_heads * d_v, d_model)),
        "bo": jnp.zeros((1, d_model), jnp.float32),
        "w1": w(ks[5], (d_model, d_ff)),
        "b1": jnp.zeros((1, d_ff), jnp.float32),
        "w2": w(ks[6], (d_ff, d_model)),
        "b2": jnp.zeros((1, d_model), jnp.float32),
        "g1": jnp.ones((1, d_model), jnp.float32),
        "be1": jnp.zeros((1, d_model), jnp.float32),
        "g2": jnp.ones((1, d_model), jnp.float32),
        "be2": jnp.zeros((1, d_model), jnp.float32),
    }

    out = transformer_encoder_stack(x, params, num_heads=num_heads, d_k=d_k, d_v=d_v)
    out = jax.block_until_ready(out)

    ref = _reference(x, params, num_heads, d_k, d_v)
    assert out.shape == (B, S, d_model)
    assert jnp.allclose(out, ref, atol=5e-2, rtol=5e-2), "mismatch vs reference"

    print("KERNEL_OK")
</pallas_src>

<mosaic_0001>
module attributes {stable_mosaic.version = 11 : i64} {
  func.func @encoder_kernel(%arg0: i32, %arg1: i32, %arg2: memref<1x8x32xf32, #tpu.memory_space<vmem>>, %arg3: memref<1x8x32xf32, #tpu.memory_space<vmem>>, %arg4: memref<4x32x8xbf16, #tpu.memory_space<vmem>>, %arg5: memref<4x1x8xf32, #tpu.memory_space<vmem>>, %arg6: memref<4x32x8xbf16, #tpu.memory_space<vmem>>, %arg7: memref<4x1x8xf32, #tpu.memory_space<vmem>>, %arg8: memref<4x32x8xbf16, #tpu.memory_space<vmem>>, %arg9: memref<4x1x8xf32, #tpu.memory_space<vmem>>, %arg10: memref<4x8x32xbf16, #tpu.memory_space<vmem>>, %arg11: memref<1x32xf32, #tpu.memory_space<vmem>>, %arg12: memref<32x128xbf16, #tpu.memory_space<vmem>>, %arg13: memref<1x128xf32, #tpu.memory_space<vmem>>, %arg14: memref<128x32xbf16, #tpu.memory_space<vmem>>, %arg15: memref<1x32xf32, #tpu.memory_space<vmem>>, %arg16: memref<1x32xf32, #tpu.memory_space<vmem>>, %arg17: memref<1x32xf32, #tpu.memory_space<vmem>>, %arg18: memref<1x32xf32, #tpu.memory_space<vmem>>, %arg19: memref<1x32xf32, #tpu.memory_space<vmem>>, %arg20: memref<1x8x32xf32, #tpu.memory_space<vmem>>) attributes {dimension_semantics = [#tpu.dimension_semantics<parallel>, #tpu.dimension_semantics<parallel>], iteration_bounds = array<i64: 2, 1>, scalar_prefetch = 0 : i64, scratch_operands = 0 : i64, tpu.core_type = #tpu.core_type<tc>, window_params = [{transform_indices = @transform_0, window_bounds = array<i64: 1, 8, 32>}, {transform_indices = @transform_1, window_bounds = array<i64: 1, 8, 32>}, {pipeline_mode = #tpu.pipeline_mode<synchronous>, transform_indices = @transform_2, window_bounds = array<i64: 4, 32, 8>}, {pipeline_mode = #tpu.pipeline_mode<synchronous>, transform_indices = @transform_3, window_bounds = array<i64: 4, 1, 8>}, {pipeline_mode = #tpu.pipeline_mode<synchronous>, transform_indices = @transform_4, window_bounds = array<i64: 4, 32, 8>}, {pipeline_mode = #tpu.pipeline_mode<synchronous>, transform_indices = @transform_5, window_bounds = array<i64: 4, 1, 8>}, {pipeline_mode = #tpu.pipeline_mode<synchronous>, transform_indices = @transform_6, window_bounds = array<i64: 4, 32, 8>}, {pipeline_mode = #tpu.pipeline_mode<synchronous>, transform_indices = @transform_7, window_bounds = array<i64: 4, 1, 8>}, {pipeline_mode = #tpu.pipeline_mode<synchronous>, transform_indices = @transform_8, window_bounds = array<i64: 4, 8, 32>}, {pipeline_mode = #tpu.pipeline_mode<synchronous>, transform_indices = @transform_9, window_bounds = array<i64: 1, 32>}, {pipeline_mode = #tpu.pipeline_mode<synchronous>, transform_indices = @transform_10, window_bounds = array<i64: 32, 128>}, {pipeline_mode = #tpu.pipeline_mode<synchronous>, transform_indices = @transform_11, window_bounds = array<i64: 1, 128>}, {pipeline_mode = #tpu.pipeline_mode<synchronous>, transform_indices = @transform_12, window_bounds = array<i64: 128, 32>}, {pipeline_mode = #tpu.pipeline_mode<synchronous>, transform_indices = @transform_13, window_bounds = array<i64: 1, 32>}, {pipeline_mode = #tpu.pipeline_mode<synchronous>, transform_indices = @transform_14, window_bounds = array<i64: 1, 32>}, {pipeline_mode = #tpu.pipeline_mode<synchronous>, transform_indices = @transform_15, window_bounds = array<i64: 1, 32>}, {pipeline_mode = #tpu.pipeline_mode<synchronous>, transform_indices = @transform_16, window_bounds = array<i64: 1, 32>}, {pipeline_mode = #tpu.pipeline_mode<synchronous>, transform_indices = @transform_17, window_bounds = array<i64: 1, 32>}, {transform_indices = @transform_18, window_bounds = array<i64: 1, 8, 32>}]} {
    %c0 = arith.constant 0 : index
    %c0_0 = arith.constant 0 : index
    %c0_1 = arith.constant 0 : index
    %0 = vector.load %arg2[%c0, %c0_0, %c0_1] : memref<1x8x32xf32, #tpu.memory_space<vmem>>, vector<1x8x32xf32>
    %1 = vector.shape_cast %0 : vector<1x8x32xf32> to vector<8x32xf32>
    %c0_2 = arith.constant 0 : index
    %c0_3 = arith.constant 0 : index
    %c0_4 = arith.constant 0 : index
    %2 = vector.load %arg3[%c0_2, %c0_3, %c0_4] : memref<1x8x32xf32, #tpu.memory_space<vmem>>, vector<1x8x32xf32>
    %3 = vector.shape_cast %2 : vector<1x8x32xf32> to vector<8x32xf32>
    %4 = arith.truncf %1 : vector<8x32xf32> to vector<8x32xbf16>
    %5 = vector.shape_cast %4 : vector<8x32xbf16> to vector<1x8x32xbf16>
    %6 = vector.shape_cast %5 : vector<1x8x32xbf16> to vector<1x8x32xbf16>
    %7 = vector.broadcast %6 : vector<1x8x32xbf16> to vector<4x8x32xbf16>
    %8 = arith.truncf %3 : vector<8x32xf32> to vector<8x32xbf16>
    %9 = vector.shape_cast %8 : vector<8x32xbf16> to vector<1x8x32xbf16>
    %10 = vector.shape_cast %9 : vector<1x8x32xbf16> to vector<1x8x32xbf16>
    %11 = vector.broadcast %10 : vector<1x8x32xbf16> to vector<4x8x32xbf16>
    %c0_5 = arith.constant 0 : index
    %c0_6 = arith.constant 0 : index
    %c0_7 = arith.constant 0 : index
    %12 = vector.load %arg4[%c0_5, %c0_6, %c0_7] : memref<4x32x8xbf16, #tpu.memory_space<vmem>>, vector<4x32x8xbf16>
    %cst = arith.constant dense<0.000000e+00> : vector<4x8x8xf32>
    %13 = tpu.matmul %7, %12, %cst {dimension_numbers = #tpu.dot_dimension_numbers<[2], [1], [1], [2], [0, 0, 0, 1, 1, 2], [0], [0]>} : vector<4x8x32xbf16>, vector<4x32x8xbf16>, vector<4x8x8xf32> -> vector<4x8x8xf32>
    %c0_8 = arith.constant 0 : index
    %c0_9 = arith.constant 0 : index
    %c0_10 = arith.constant 0 : index
    %14 = vector.load %arg5[%c0_8, %c0_9, %c0_10] : memref<4x1x8xf32, #tpu.memory_space<vmem>>, vector<4x1x8xf32>
    %15 = vector.broadcast %14 : vector<4x1x8xf32> to vector<4x8x8xf32>
    %16 = arith.addf %13, %15 : vector<4x8x8xf32>
    %c0_11 = arith.constant 0 : index
    %c0_12 = arith.constant 0 : index
    %c0_13 = arith.constant 0 : index
    %17 = vector.load %arg6[%c0_11, %c0_12, %c0_13] : memref<4x32x8xbf16, #tpu.memory_space<vmem>>, vector<4x32x8xbf16>
    %cst_14 = arith.constant dense<0.000000e+00> : vector<4x8x8xf32>
    %18 = tpu.matmul %11, %17, %cst_14 {dimension_numbers = #tpu.dot_dimension_numbers<[2], [1], [1], [2], [0, 0, 0, 1, 1, 2], [0], [0]>} : vector<4x8x32xbf16>, vector<4x32x8xbf16>, vector<4x8x8xf32> -> vector<4x8x8xf32>
    %c0_15 = arith.constant 0 : index
    %c0_16 = arith.constant 0 : index
    %c0_17 = arith.constant 0 : index
    %19 = vector.load %arg7[%c0_15, %c0_16, %c0_17] : memref<4x1x8xf32, #tpu.memory_space<vmem>>, vector<4x1x8xf32>
    %20 = vector.broadcast %19 : vector<4x1x8xf32> to vector<4x8x8xf32>
    %21 = arith.addf %18, %20 : vector<4x8x8xf32>
    %c0_18 = arith.constant 0 : index
    %c0_19 = arith.constant 0 : index
    %c0_20 = arith.constant 0 : index
    %22 = vector.load %arg8[%c0_18, %c0_19, %c0_20] : memref<4x32x8xbf16, #tpu.memory_space<vmem>>, vector<4x32x8xbf16>
    %cst_21 = arith.constant dense<0.000000e+00> : vector<4x8x8xf32>
    %23 = tpu.matmul %11, %22, %cst_21 {dimension_numbers = #tpu.dot_dimension_numbers<[2], [1], [1], [2], [0, 0, 0, 1, 1, 2], [0], [0]>} : vector<4x8x32xbf16>, vector<4x32x8xbf16>, vector<4x8x8xf32> -> vector<4x8x8xf32>
    %c0_22 = arith.constant 0 : index
    %c0_23 = arith.constant 0 : index
    %c0_24 = arith.constant 0 : index
    %24 = vector.load %arg9[%c0_22, %c0_23, %c0_24] : memref<4x1x8xf32, #tpu.memory_space<vmem>>, vector<4x1x8xf32>
    %25 = vector.broadcast %24 : vector<4x1x8xf32> to vector<4x8x8xf32>
    %26 = arith.addf %23, %25 : vector<4x8x8xf32>
    %cst_25 = arith.constant 0.353553385 : f32
    %27 = vector.broadcast %cst_25 : f32 to vector<4x8x8xf32>
    %28 = arith.mulf %16, %27 : vector<4x8x8xf32>
    %29 = arith.truncf %28 : vector<4x8x8xf32> to vector<4x8x8xbf16>
    %30 = arith.truncf %21 : vector<4x8x8xf32> to vector<4x8x8xbf16>
    %31 = arith.truncf %26 : vector<4x8x8xf32> to vector<4x8x8xbf16>
    %cst_26 = arith.constant dense<0.000000e+00> : vector<4x8x8xf32>
    %32 = tpu.matmul %29, %30, %cst_26 {dimension_numbers = #tpu.dot_dimension_numbers<[2], [2], [1], [1], [0, 0, 0, 1, 1, 1], [0], [0]>} : vector<4x8x8xbf16>, vector<4x8x8xbf16>, vector<4x8x8xf32> -> vector<4x8x8xf32>
    %cst_27 = arith.constant dense<0xFF800000> : vector<4x8xf32>
    %33 = vector.multi_reduction <maximumf>, %32, %cst_27 [2] : vector<4x8x8xf32> to vector<4x8xf32>
    %34 = vector.shape_cast %33 : vector<4x8xf32> to vector<4x8x1xf32>
    %35 = vector.broadcast %34 : vector<4x8x1xf32> to vector<4x8x8xf32>
    %36 = arith.subf %32, %35 : vector<4x8x8xf32>
    %37 = math.exp %36 : vector<4x8x8xf32>
    %cst_28 = arith.constant dense<0.000000e+00> : vector<4x8xf32>
    %38 = vector.multi_reduction <add>, %37, %cst_28 [2] : vector<4x8x8xf32> to vector<4x8xf32>
    %39 = vector.shape_cast %38 : vector<4x8xf32> to vector<4x8x1xf32>
    %40 = arith.truncf %37 : vector<4x8x8xf32> to vector<4x8x8xbf16>
    %cst_29 = arith.constant dense<0.000000e+00> : vector<4x8x8xf32>
    %41 = tpu.matmul %40, %31, %cst_29 {dimension_numbers = #tpu.dot_dimension_numbers<[2], [1], [1], [2], [0, 0, 0, 1, 1, 2], [0], [0]>} : vector<4x8x8xbf16>, vector<4x8x8xbf16>, vector<4x8x8xf32> -> vector<4x8x8xf32>
    %42 = tpu.reciprocal %39 {approx = true} : vector<4x8x1xf32> -> vector<4x8x1xf32>
    %43 = vector.broadcast %42 : vector<4x8x1xf32> to vector<4x8x8xf32>
    %44 = arith.mulf %41, %43 : vector<4x8x8xf32>
    %45 = arith.truncf %44 : vector<4x8x8xf32> to vector<4x8x8xbf16>
    %c0_30 = arith.constant 0 : index
    %c0_31 = arith.constant 0 : index
    %c0_32 = arith.constant 0 : index
    %46 = vector.load %arg10[%c0_30, %c0_31, %c0_32] : memref<4x8x32xbf16, #tpu.memory_space<vmem>>, vector<4x8x32xbf16>
    %cst_33 = arith.constant dense<0.000000e+00> : vector<4x8x32xf32>
    %47 = tpu.matmul %45, %46, %cst_33 {dimension_numbers = #tpu.dot_dimension_numbers<[2], [1], [1], [2], [0, 0, 0, 1, 1, 2], [0], [0]>} : vector<4x8x8xbf16>, vector<4x8x32xbf16>, vector<4x8x32xf32> -> vector<4x8x32xf32>
    %cst_34 = arith.constant dense<0.000000e+00> : vector<8x32xf32>
    %48 = vector.multi_reduction <add>, %47, %cst_34 [0] : vector<4x8x32xf32> to vector<8x32xf32>
    %c0_35 = arith.constant 0 : index
    %c0_36 = arith.constant 0 : index
    %49 = vector.load %arg11[%c0_35, %c0_36] : memref<1x32xf32, #tpu.memory_space<vmem>>, vector<1x32xf32>
    %50 = vector.broadcast %49 : vector<1x32xf32> to vector<8x32xf32>
    %51 = arith.addf %48, %50 : vector<8x32xf32>
    %52 = arith.addf %1, %51 : vector<8x32xf32>
    %c0_37 = arith.constant 0 : index
    %c0_38 = arith.constant 0 : index
    %53 = vector.load %arg16[%c0_37, %c0_38] : memref<1x32xf32, #tpu.memory_space<vmem>>, vector<1x32xf32>
    %c0_39 = arith.constant 0 : index
    %c0_40 = arith.constant 0 : index
    %54 = vector.load %arg17[%c0_39, %c0_40] : memref<1x32xf32, #tpu.memory_space<vmem>>, vector<1x32xf32>
    %cst_41 = arith.constant dense<0.000000e+00> : vector<8xf32>
    %55 = vector.multi_reduction <add>, %52, %cst_41 [1] : vector<8x32xf32> to vector<8xf32>
    %56 = vector.shape_cast %55 : vector<8xf32> to vector<8x1xf32>
    %cst_42 = arith.constant 3.200000e+01 : f32
    %57 = vector.broadcast %cst_42 : f32 to vector<8x1xf32>
    %58 = arith.divf %56, %57 : vector<8x1xf32>
    %59 = vector.broadcast %58 : vector<8x1xf32> to vector<8x32xf32>
    %60 = arith.subf %52, %59 : vector<8x32xf32>
    %61 = arith.mulf %60, %60 : vector<8x32xf32>
    %cst_43 = arith.constant dense<0.000000e+00> : vector<8xf32>
    %62 = vector.multi_reduction <add>, %61, %cst_43 [1] : vector<8x32xf32> to vector<8xf32>
    %63 = vector.shape_cast %62 : vector<8xf32> to vector<8x1xf32>
    %cst_44 = arith.constant 3.200000e+01 : f32
    %64 = vector.broadcast %cst_44 : f32 to vector<8x1xf32>
    %65 = arith.divf %63, %64 : vector<8x1xf32>
    %66 = vector.broadcast %58 : vector<8x1xf32> to vector<8x32xf32>
    %67 = arith.subf %52, %66 : vector<8x32xf32>
    %cst_45 = arith.constant 9.99999974E-6 : f32
    %68 = vector.broadcast %cst_45 : f32 to vector<8x1xf32>
    %69 = arith.addf %65, %68 : vector<8x1xf32>
    %70 = math.rsqrt %69 : vector<8x1xf32>
    %71 = vector.broadcast %70 : vector<8x1xf32> to vector<8x32xf32>
    %72 = arith.mulf %67, %71 : vector<8x32xf32>
    %73 = vector.broadcast %53 : vector<1x32xf32> to vector<8x32xf32>
    %74 = arith.mulf %72, %73 : vector<8x32xf32>
    %75 = vector.broadcast %54 : vector<1x32xf32> to vector<8x32xf32>
    %76 = arith.addf %74, %75 : vector<8x32xf32>
    %77 = arith.truncf %76 : vector<8x32xf32> to vector<8x32xbf16>
    %c0_46 = arith.constant 0 : index
    %c0_47 = arith.constant 0 : index
    %78 = vector.load %arg12[%c0_46, %c0_47] : memref<32x128xbf16, #tpu.memory_space<vmem>>, vector<32x128xbf16>
    %cst_48 = arith.constant dense<0.000000e+00> : vector<8x128xf32>
    %79 = tpu.matmul %77, %78, %cst_48 {dimension_numbers = #tpu.dot_dimension_numbers<[1], [0], [0], [1], [0, 0, 1, 1], [], []>} : vector<8x32xbf16>, vector<32x128xbf16>, vector<8x128xf32> -> vector<8x128xf32>
    %c0_49 = arith.constant 0 : index
    %c0_50 = arith.constant 0 : index
    %80 = vector.load %arg13[%c0_49, %c0_50] : memref<1x128xf32, #tpu.memory_space<vmem>>, vector<1x128xf32>
    %81 = vector.broadcast %80 : vector<1x128xf32> to vector<8x128xf32>
    %82 = arith.addf %79, %81 : vector<8x128xf32>
    %cst_51 = arith.constant 0.000000e+00 : f32
    %83 = vector.broadcast %cst_51 : f32 to vector<8x128xf32>
    %84 = arith.maximumf %82, %83 : vector<8x128xf32>
    %85 = arith.truncf %84 : vector<8x128xf32> to vector<8x128xbf16>
    %c0_52 = arith.constant 0 : index
    %c0_53 = arith.constant 0 : index
    %86 = vector.load %arg14[%c0_52, %c0_53] : memref<128x32xbf16, #tpu.memory_space<vmem>>, vector<128x32xbf16>
    %cst_54 = arith.constant dense<0.000000e+00> : vector<8x32xf32>
    %87 = tpu.matmul %85, %86, %cst_54 {dimension_numbers = #tpu.dot_dimension_numbers<[1], [0], [0], [1], [0, 0, 1, 1], [], []>} : vector<8x128xbf16>, vector<128x32xbf16>, vector<8x32xf32> -> vector<8x32xf32>
    %c0_55 = arith.constant 0 : index
    %c0_56 = arith.constant 0 : index
    %88 = vector.load %arg15[%c0_55, %c0_56] : memref<1x32xf32, #tpu.memory_space<vmem>>, vector<1x32xf32>
    %89 = vector.broadcast %88 : vector<1x32xf32> to vector<8x32xf32>
    %90 = arith.addf %87, %89 : vector<8x32xf32>
    %91 = arith.addf %76, %90 : vector<8x32xf32>
    %c0_57 = arith.constant 0 : index
    %c0_58 = arith.constant 0 : index
    %92 = vector.load %arg18[%c0_57, %c0_58] : memref<1x32xf32, #tpu.memory_space<vmem>>, vector<1x32xf32>
    %c0_59 = arith.constant 0 : index
    %c0_60 = arith.constant 0 : index
    %93 = vector.load %arg19[%c0_59, %c0_60] : memref<1x32xf32, #tpu.memory_space<vmem>>, vector<1x32xf32>
    %cst_61 = arith.constant dense<0.000000e+00> : vector<8xf32>
    %94 = vector.multi_reduction <add>, %91, %cst_61 [1] : vector<8x32xf32> to vector<8xf32>
    %95 = vector.shape_cast %94 : vector<8xf32> to vector<8x1xf32>
    %cst_62 = arith.constant 3.200000e+01 : f32
    %96 = vector.broadcast %cst_62 : f32 to vector<8x1xf32>
    %97 = arith.divf %95, %96 : vector<8x1xf32>
    %98 = vector.broadcast %97 : vector<8x1xf32> to vector<8x32xf32>
    %99 = arith.subf %91, %98 : vector<8x32xf32>
    %100 = arith.mulf %99, %99 : vector<8x32xf32>
    %cst_63 = arith.constant dense<0.000000e+00> : vector<8xf32>
    %101 = vector.multi_reduction <add>, %100, %cst_63 [1] : vector<8x32xf32> to vector<8xf32>
    %102 = vector.shape_cast %101 : vector<8xf32> to vector<8x1xf32>
    %cst_64 = arith.constant 3.200000e+01 : f32
    %103 = vector.broadcast %cst_64 : f32 to vector<8x1xf32>
    %104 = arith.divf %102, %103 : vector<8x1xf32>
    %105 = vector.broadcast %97 : vector<8x1xf32> to vector<8x32xf32>
    %106 = arith.subf %91, %105 : vector<8x32xf32>
    %cst_65 = arith.constant 9.99999974E-6 : f32
    %107 = vector.broadcast %cst_65 : f32 to vector<8x1xf32>
    %108 = arith.addf %104, %107 : vector<8x1xf32>
    %109 = math.rsqrt %108 : vector<8x1xf32>
    %110 = vector.broadcast %109 : vector<8x1xf32> to vector<8x32xf32>
    %111 = arith.mulf %106, %110 : vector<8x32xf32>
    %112 = vector.broadcast %92 : vector<1x32xf32> to vector<8x32xf32>
    %113 = arith.mulf %111, %112 : vector<8x32xf32>
    %114 = vector.broadcast %93 : vector<1x32xf32> to vector<8x32xf32>
    %115 = arith.addf %113, %114 : vector<8x32xf32>
    %c0_66 = arith.constant 0 : index
    %c0_67 = arith.constant 0 : index
    %c0_68 = arith.constant 0 : index
    %116 = vector.load %arg20[%c0_66, %c0_67, %c0_68] : memref<1x8x32xf32, #tpu.memory_space<vmem>>, vector<1x8x32xf32>
    %117 = vector.shape_cast %116 : vector<1x8x32xf32> to vector<8x32xf32>
    %118 = vector.shape_cast %115 : vector<8x32xf32> to vector<1x8x32xf32>
    tpu.vector_store %arg20[%c0_66, %c0_67, %c0_68], %118 {strides = array<i32>} : memref<1x8x32xf32, #tpu.memory_space<vmem>>, vector<1x8x32xf32>,
    return
  }
  func.func @transform_0(%arg0: i32, %arg1: i32) -> (i32, i32, i32) {
    %c0_i32 = arith.constant 0 : i32
    %c0_i32_0 = arith.constant 0 : i32
    return %arg0, %arg1, %c0_i32 : i32, i32, i32
  }
  func.func @transform_1(%arg0: i32, %arg1: i32) -> (i32, i32, i32) {
    %c0_i32 = arith.constant 0 : i32
    %c0_i32_0 = arith.constant 0 : i32
    %c0_i32_1 = arith.constant 0 : i32
    return %arg0, %c0_i32, %c0_i32_0 : i32, i32, i32
  }
  func.func @transform_2(%arg0: i32, %arg1: i32) -> (i32, i32, i32) {
    %c0_i32 = arith.constant 0 : i32
    %c0_i32_0 = arith.constant 0 : i32
    %c0_i32_1 = arith.constant 0 : i32
    %c0_i32_2 = arith.constant 0 : i32
    return %c0_i32, %c0_i32_0, %c0_i32_1 : i32, i32, i32
  }
  func.func @transform_3(%arg0: i32, %arg1: i32) -> (i32, i32, i32) {
    %c0_i32 = arith.constant 0 : i32
    %c0_i32_0 = arith.constant 0 : i32
    %c0_i32_1 = arith.constant 0 : i32
    %c0_i32_2 = arith.constant 0 : i32
    return %c0_i32, %c0_i32_0, %c0_i32_1 : i32, i32, i32
  }
  func.func @transform_4(%arg0: i32, %arg1: i32) -> (i32, i32, i32) {
    %c0_i32 = arith.constant 0 : i32
    %c0_i32_0 = arith.constant 0 : i32
    %c0_i32_1 = arith.constant 0 : i32
    %c0_i32_2 = arith.constant 0 : i32
    return %c0_i32, %c0_i32_0, %c0_i32_1 : i32, i32, i32
  }
  func.func @transform_5(%arg0: i32, %arg1: i32) -> (i32, i32, i32) {
    %c0_i32 = arith.constant 0 : i32
    %c0_i32_0 = arith.constant 0 : i32
    %c0_i32_1 = arith.constant 0 : i32
    %c0_i32_2 = arith.constant 0 : i32
    return %c0_i32, %c0_i32_0, %c0_i32_1 : i32, i32, i32
  }
  func.func @transform_6(%arg0: i32, %arg1: i32) -> (i32, i32, i32) {
    %c0_i32 = arith.constant 0 : i32
    %c0_i32_0 = arith.constant 0 : i32
    %c0_i32_1 = arith.constant 0 : i32
    %c0_i32_2 = arith.constant 0 : i32
    return %c0_i32, %c0_i32_0, %c0_i32_1 : i32, i32, i32
  }
  func.func @transform_7(%arg0: i32, %arg1: i32) -> (i32, i32, i32) {
    %c0_i32 = arith.constant 0 : i32
    %c0_i32_0 = arith.constant 0 : i32
    %c0_i32_1 = arith.constant 0 : i32
    %c0_i32_2 = arith.constant 0 : i32
    return %c0_i32, %c0_i32_0, %c0_i32_1 : i32, i32, i32
  }
  func.func @transform_8(%arg0: i32, %arg1: i32) -> (i32, i32, i32) {
    %c0_i32 = arith.constant 0 : i32
    %c0_i32_0 = arith.constant 0 : i32
    %c0_i32_1 = arith.constant 0 : i32
    %c0_i32_2 = arith.constant 0 : i32
    return %c0_i32, %c0_i32_0, %c0_i32_1 : i32, i32, i32
  }
  func.func @transform_9(%arg0: i32, %arg1: i32) -> (i32, i32) {
    %c0_i32 = arith.constant 0 : i32
    %c0_i32_0 = arith.constant 0 : i32
    %c0_i32_1 = arith.constant 0 : i32
    return %c0_i32, %c0_i32_0 : i32, i32
  }
  func.func @transform_10(%arg0: i32, %arg1: i32) -> (i32, i32) {
    %c0_i32 = arith.constant 0 : i32
    %c0_i32_0 = arith.constant 0 : i32
    %c0_i32_1 = arith.constant 0 : i32
    return %c0_i32, %c0_i32_0 : i32, i32
  }
  func.func @transform_11(%arg0: i32, %arg1: i32) -> (i32, i32) {
    %c0_i32 = arith.constant 0 : i32
    %c0_i32_0 = arith.constant 0 : i32
    %c0_i32_1 = arith.constant 0 : i32
    return %c0_i32, %c0_i32_0 : i32, i32
  }
  func.func @transform_12(%arg0: i32, %arg1: i32) -> (i32, i32) {
    %c0_i32 = arith.constant 0 : i32
    %c0_i32_0 = arith.constant 0 : i32
    %c0_i32_1 = arith.constant 0 : i32
    return %c0_i32, %c0_i32_0 : i32, i32
  }
  func.func @transform_13(%arg0: i32, %arg1: i32) -> (i32, i32) {
    %c0_i32 = arith.constant 0 : i32
    %c0_i32_0 = arith.constant 0 : i32
    %c0_i32_1 = arith.constant 0 : i32
    return %c0_i32, %c0_i32_0 : i32, i32
  }
  func.func @transform_14(%arg0: i32, %arg1: i32) -> (i32, i32) {
    %c0_i32 = arith.constant 0 : i32
    %c0_i32_0 = arith.constant 0 : i32
    %c0_i32_1 = arith.constant 0 : i32
    return %c0_i32, %c0_i32_0 : i32, i32
  }
  func.func @transform_15(%arg0: i32, %arg1: i32) -> (i32, i32) {
    %c0_i32 = arith.constant 0 : i32
    %c0_i32_0 = arith.constant 0 : i32
    %c0_i32_1 = arith.constant 0 : i32
    return %c0_i32, %c0_i32_0 : i32, i32
  }
  func.func @transform_16(%arg0: i32, %arg1: i32) -> (i32, i32) {
    %c0_i32 = arith.constant 0 : i32
    %c0_i32_0 = arith.constant 0 : i32
    %c0_i32_1 = arith.constant 0 : i32
    return %c0_i32, %c0_i32_0 : i32, i32
  }
  func.func @transform_17(%arg0: i32, %arg1: i32) -> (i32, i32) {
    %c0_i32 = arith.constant 0 : i32
    %c0_i32_0 = arith.constant 0 : i32
    %c0_i32_1 = arith.constant 0 : i32
    return %c0_i32, %c0_i32_0 : i32, i32
  }
  func.func @transform_18(%arg0: i32, %arg1: i32) -> (i32, i32, i32) {
    %c0_i32 = arith.constant 0 : i32
    %c0_i32_0 = arith.constant 0 : i32
    return %arg0, %arg1, %c0_i32 : i32, i32, i32
  }
}

</mosaic_0001>

<bundles_post_ra>
// kernel: tpu_custom_call.1
= control target key start
LH: loop header
LB: loop body
LE: loop exit
PB: predicated region body
PF: predicated region fallthrough
CT: control target
= control target key end

     0   :  { %s3462_s0 = inlined_call_operand.vmem [shape: f32[2,8,32], index: 0, kind: input, shape index: {}]   ;;  %s3463_s1 = inlined_call_operand.vmem [shape: f32[2,8,32], index: 1, kind: input, shape index: {}]   ;;  %s3464_s2 = inlined_call_operand.vmem [shape: bf16[4,32,8], index: 2, kind: input, shape index: {}]   ;;  %s3465_s3 = inlined_call_operand.vmem [shape: f32[4,1,8], index: 3, kind: input, shape index: {}]   ;;  %s3466_s4 = inlined_call_operand.vmem [shape: bf16[4,32,8], index: 4, kind: input, shape index: {}]   ;;  %s3467_s5 = inlined_call_operand.vmem [shape: f32[4,1,8], index: 5, kind: input, shape index: {}]   ;;  %s3468_s6 = inlined_call_operand.vmem [shape: bf16[4,32,8], index: 6, kind: input, shape index: {}]   ;;  %s3469_s7 = inlined_call_operand.vmem [shape: f32[4,1,8], index: 7, kind: input, shape index: {}]   ;;  %s3470_s8 = inlined_call_operand.vmem [shape: bf16[4,8,32], index: 8, kind: input, shape index: {}]   ;;  %s3471_s9 = inlined_call_operand.vmem [shape: f32[1,32], index: 9, kind: input, shape index: {}]   ;;  %s3472_s10 = inlined_call_operand.vmem [shape: bf16[32,128], index: 10, kind: input, shape index: {}]   ;;  %s3473_s11 = inlined_call_operand.vmem [shape: f32[1,128], index: 11, kind: input, shape index: {}]   ;;  %s3474_s12 = inlined_call_operand.vmem [shape: bf16[128,32], index: 12, kind: input, shape index: {}]   ;;  %s3475_s13 = inlined_call_operand.vmem [shape: f32[1,32], index: 13, kind: input, shape index: {}]   ;;  %s3476_s14 = inlined_call_operand.vmem [shape: f32[1,32], index: 14, kind: input, shape index: {}]   ;;  %s3477_s15 = inlined_call_operand.vmem [shape: f32[1,32], index: 15, kind: input, shape index: {}]   ;;  %s3478_s16 = inlined_call_operand.vmem [shape: f32[1,32], index: 16, kind: input, shape index: {}]   ;;  %s3479_s17 = inlined_call_operand.vmem [shape: f32[1,32], index: 17, kind: input, shape index: {}]   ;;  %s3480_s18 = inlined_call_operand.hbm [shape: f32[2,8,32], index: 18, kind: output, shape index: {}]  }
   0x1   :  { %3490 = sst [smem:[#allocation12_spill]] %s3462_s0 }
   0x2   :  { %3491 = sst [smem:[#allocation13_spill]] %s3463_s1 }
   0x3   :  { %3492 = sst [smem:[#allocation14_spill]] %s3464_s2 }
   0x4   :  { %3493 = sst [smem:[#allocation15_spill]] %s3465_s3 }
   0x5   :  { %3494 = sst [smem:[#allocation16_spill]] %s3480_s18 }
   0x6   :  { %23 = vsyncpa [#allocation3], 0 }
   0x7   :  { %25 = vsyncpa [#allocation3 + $0x1], 0  ;;  %s3009_s27 = smov 0   ;;  %s3011_s28 = smov 0  }
   0x8   :  { %s3013_s29 = smov 0   ;;  %s3015_s30 = smov 0  }
   0x9   :  { %s3017_s0 = smov 0   ;;  %s3019_s19 = smov 0  }
   0xa LB: > { %3495 = sst [smem:[#allocation5_spill]] %s2889_s27  ;;  %s2362_s1 = sadd.s32 4294967295, %s2909_s19   ;;  %s2909_s19 = sphi %s3019_s19, %s31_s19   ;;  %s2905_s0 = sphi %s3017_s0, %s3516_s0   ;;  %s2901_s30 = sphi %s3015_s30, %s3515_s30   ;;  %s2897_s29 = sphi %s3013_s29, %s3519_s29   ;;  %s2893_s28 = sphi %s3011_s28, %s3518_s28   ;;  %s2889_s27 = sphi %s3009_s27, %s3517_s27  }
   0xb   : > { %3496 = sst [smem:[#allocation6_spill]] %s2897_s29  ;;  %s2363_s20 = sadd.s32 4294967294, %s2909_s19  }
   0xc   : > { %3497 = sst [smem:[#allocation7_spill]] %s2905_s0  ;;  %s43_s21 = sadd.s32 1, %s2905_s0 }
   0xd   : > { %3498 = sst [smem:[#allocation8_spill]] %s2909_s19  ;;  %s442_s22 = sadd.s32 1, %s2897_s29 }
   0xe   : > { %p45_p0 = scmp.ge.s32.totalorder %s43_s21, 2  ;;  %p452_p1 = scmp.ne.s32.totalorder %s2897_s29, %s2893_s28 }
   0xf   : > { %p453_p2 = scmp.eq.s32.totalorder %s2362_s1, 1  ;;  %p458_p3 = scmp.ne.s32.totalorder %s2893_s28, %s2889_s27 }
  0x10   : > { %s3521_s21 = smov (%p45_p0, %s43_s21), 0  ;;  %p459_p5 = scmp.eq.s32.totalorder %s2363_s20, 1 }
  0x11   : > { %3499 = sst [smem:[#allocation9_spill]] %s3521_s21  ;;  %p3049_p4 = por %p453_p2, %p452_p1 }
  0x12   : > { %s437_s23 = ssub.s32 %s2905_s0, %s3521_s21  ;;  %p2366_p6 = scmp.ge.s32.totalorder %s2909_s19, 1 }
  0x13   : > { %p440_p7 = scmp.eq.s32.totalorder %s437_s23, 0  ;;  %p3056_p8 = por %p459_p5, %p458_p3 }
  0x14   : > { %p542_p9 = scmp.lt.s32.totalorder %s2909_s19, 3 }
  0x15   : > { %s3501_s24 = scalar_select %p3056_p8, 1, 0 }
  0x16   : > { %s3062_s25 = scalar_select %p440_p7, %s2897_s29, %s442_s22  }
  0x17   : > { %3502 = sst [smem:[#allocation10_spill]] %s3501_s24  ;;  %p543_p10 = pnand %p2366_p6, %p542_p9 }
  0x18   : > { %3503 = sst [smem:[#allocation11_spill]] %s3062_s25  ;;  %s3504_s27 = sld [smem:[#allocation14_spill]] (!%p543_p10)  ;;  %v2911_v1 = vmov (!%p543_p10), 0.0   ;;  %vm2912_vm0 = vmmov (!%p543_p10), 0   ;;  %vm674_vm1 = vcmask (!%p543_p10), 261120   ;;  %v2782_v7 = vld [vmem:[%s3466_s4 + $0x10] sm:$0xff] (!%p543_p10)  }
  0x19   : > { %546 = sbr.rel (%p543_p10) target bundleno = 2182 (0x886), region = 92  ;;  %2524 = vmatprep.subr.bf16.mxu0 (!%p543_p10), %v2911_v1  ;;  %2548 = vmatprep.subr.bf16.mxu1 (!%p543_p10), %v2911_v1  ;;  %p602_p11 = scmp.lt.s32.totalorder (!%p543_p10), %s2901_s30, 1  ;;  %v2784_v10 = vld [vmem:[%s3466_s4 + $0x18] sm:$0xff] (!%p543_p10)   ;;  %v2786_v14 = vld [vmem:[%s3466_s4 + $0x30] sm:$0xff] (!%p543_p10)   ;;  %v2789_v17 = vld [vmem:[%s3466_s4] sm:$0xff] (!%p543_p10)   ;;  %vm1397_vm2 = vcmask (!%p543_p10), 64512  }
  0x1a   : > { %2528 = vmatprep.mubr.msk.bf16.mxu0 (!%p543_p10), %vm2912_vm0, %v2911_v1  ;;  %2552 = vmatprep.mubr.msk.bf16.mxu1 (!%p543_p10), %vm2912_vm0, %v2911_v1  ;;  %s3506_s22 = sld [smem:[#allocation12_spill]] (!%p543_p10)  ;;  %s3507_s19 = sld [smem:[#allocation13_spill]] (!%p543_p10)  ;;  %v2788_v16 = vld [vmem:[%s3466_s4 + $0x38] sm:$0xff] (!%p543_p10)   ;;  %v2793_v18 = vld [vmem:[%s3468_s6 + $0x10] sm:$0xff] (!%p543_p10)   ;;  %v2790_v19 = vld [vmem:[%s3466_s4 + $0x8] sm:$0xff] (!%p543_p10)   ;;  %vm1625_vm3 = vcmask (!%p543_p10), 1043456  }
  0x1b   : > { %v2794_v20 = vld [vmem:[%s3468_s6 + $0x18] sm:$0xff] (!%p543_p10)   ;;  %v2791_v21 = vld [vmem:[%s3466_s4 + $0x20] sm:$0xff] (!%p543_p10)   ;;  %v2792_v22 = vld [vmem:[%s3466_s4 + $0x28] sm:$0xff] (!%p543_p10)   ;;  %s3508_s3 = sld [smem:[#allocation15_spill]] (!%p543_p10)  ;;  %s599_s29 = sand.u32 (!%p543_p10), 1, %s2893_s28  }
  0x1c   : > { %v2795_v23 = vld [vmem:[%s3468_s6 + $0x30] sm:$0xff] (!%p543_p10)   ;;  %v2796_v24 = vld [vmem:[%s3468_s6 + $0x38] sm:$0xff] (!%p543_p10)   ;;  %v2797_v25 = vld [vmem:[%s3468_s6] sm:$0xff] (!%p543_p10)  }
  0x1d   : > { %v2798_v26 = vld [vmem:[%s3468_s6 + $0x8] sm:$0xff] (!%p543_p10)   ;;  %v2799_v27 = vld [vmem:[%s3468_s6 + $0x20] sm:$0xff] (!%p543_p10)  }
  0x1e   : > { %s3505_s18 = smov (!%p543_p10), %s3504_s27  ;;  %v2777_v0 = vld [vmem:[%s3504_s27] sm:$0xff] (!%p543_p10)   ;;  %v2800_v28 = vld [vmem:[%s3468_s6 + $0x28] sm:$0xff] (!%p543_p10)   ;;  %s2449_s27 = sshll.u32 (!%p543_p10), %s2901_s30, 7 }
  0x1f   : > { %v2778_v2 = vld [vmem:[%s3505_s18 + $0x30] sm:$0xff] (!%p543_p10)   ;;  %2525 = vmatpush3.bf16.msra.mxu0 (!%p543_p10), %v2777_v0  ;;  %v2779_v3 = vld [vmem:[%s3505_s18 + $0x8] sm:$0xff] (!%p543_p10)   ;;  %v2780_v4 = vld [vmem:[%s3505_s18 + $0x38] sm:$0xff] (!%p543_p10)  }
  0x20   : > { %2549 = vmatpush3.bf16.msra.mxu1 %v2778_v2  ;;  %2526 = vmatprep.subr.bf16.mxu0 %v2911_v1  ;;  %s603_s1 = scalar_select %p602_p11, %s2901_s30, 1  ;;  %v2781_v5 = vld [vmem:[%s3505_s18 + $0x10] sm:$0xff]   ;;  %v2783_v9 = vld [vmem:[%s3505_s18 + $0x18] sm:$0xff]   ;;  %v2785_v13 = vld [vmem:[%s3505_s18 + $0x20] sm:$0xff]  }
  0x21   : > { %2550 = vmatprep.subr.bf16.mxu1 %v2911_v1  ;;  %v2787_v15 = vld [vmem:[%s3505_s18 + $0x28] sm:$0xff]   ;;  %v2387_v37 = vld [vmem:[%s3467_s5 + $0x1] ss:$0 sm:$0xff]  ;;  %v2389_v51 = vld [vmem:[%s3467_s5 + $0x3] ss:$0 sm:$0xff]  ;;  %s2913_s30 = smov [#allocation2]  }
  0x22   : > { %s2368_s21 = sshll.u32 %s603_s1, 3  ;;  %v2371_v38 = vld [vmem:[%s3508_s3 + $0x1] ss:$0 sm:$0xff]  ;;  %v2373_v53 = vld [vmem:[%s3508_s3 + $0x3] ss:$0 sm:$0xff] }
  0x23   : > { %2527 = vmatpush3.bf16.msra.mxu0 %v2779_v3  ;;  %s608_s0 = scalar_lea.vmem %s3506_s22, %s2368_s21  ;;  %s612_s20 = scalar_lea.vmem %s3507_s19, %s2368_s21 }
  0x24   : > { %2551 = vmatpush3.bf16.msra.mxu1 %v2780_v4  ;;  %2532 = vmatprep.subr.bf16.mxu0 %v2911_v1  ;;  %v3093_v6 = vld [vmem:[%s608_s0] sm:$0xff]  ;;  %s2367_s0 = sshll.u32 %s599_s29, 3  ;;  %s3509_s22 = sld [smem:[#allocation16_spill]] }
  0x25   : > { %2564 = vmatprep.subr.bf16.mxu1 %v2911_v1  ;;  %v616_v8 = vpack.c.bf16 %v3093_v6, %v3093_v6  ;;  %v615_v11 = vld [vmem:[%s612_s20] sm:$0xff]  ;;  %s601_s26 = scalar_lea.vmem [#allocation2], %s2367_s0  ;;  %s2265_s19 = scalar_lea.sflag [#allocation3], %s599_s29 }
  0x26   : > { %v3118_v12 = vpack.c.bf16 %v615_v11, %v615_v11  ;;  %v2386_v4 = vld [vmem:[%s3467_s5] ss:$0 sm:$0xff]  ;;  %s2279_s1 = sshll.u32 %s601_s26, 4  ;;  %s2835_s0 = sshll.u32 %s2913_s30, 4  ;;  %s3416_s1 = int_to_ptr.vmem [resolvable:$true] %s2279_s1  ;;  %s2836_s0 = int_to_ptr.vmem [resolvable:$false] %s2835_s0 }
  0x27   : > { %2529 = vmatmul.mubr.msk.bf16.vlgmr.msra.gmra.mrb[0].mxu0 %vm674_vm1, %v616_v8  ;;  %2553 = vmatmul.mubr.msk.bf16.vlgmr.msra.gmra.mrb[0].mxu1 %vm674_vm1, %v616_v8  ;;  %s2831_s24 = scalar_lea.vmem %s3416_s1, 128  ;;  %s2837_s25 = scalar_lea.vmem %s2836_s0, 256 }
  0x28   : > { %2533 = vmatpush3.bf16.msra.mxu0 %v2781_v5  ;;  %2565 = vmatpush3.bf16.msra.mxu1 %v2782_v7  ;;  %v2370_v7 = vld [vmem:[%s3508_s3] ss:$0 sm:$0xff]  ;;  %p2832_p12 = scmp.ne.s32.totalorder %s3416_s1, %s2831_s24  ;;  %p2838_p1 = scmp.lt.s32.totalorder %s3416_s1, %s2836_s0 }
  0x29   : > { %2534 = vmatprep.subr.bf16.mxu0 %v2911_v1  ;;  %2566 = vmatprep.subr.bf16.mxu1 %v2911_v1  ;;  %p2839_p2 = scmp.lt.s32.totalorder %s2837_s25, %s2831_s24 }
  0x2a   : > { %2536 = vmatprep.mubr.msk.bf16.mxu0 %vm2912_vm0, %v2911_v1  ;;  %2568 = vmatprep.mubr.msk.bf16.mxu1 %vm2912_vm0, %v2911_v1  ;;  %p2833_p13 = pnand %p2832_p12, %p3049_p4 }
  0x2b   : > { %p2840_p3 = por %p2839_p2, %p2838_p1 }
  0x2c   : > { %2535 = vmatpush3.bf16.msra.mxu0 %v2783_v9  ;;  %2567 = vmatpush3.bf16.msra.mxu1 %v2784_v10  ;;  %v2403_v9 = vld [vmem:[%s3469_s7 + $0x1] ss:$0 sm:$0xff]  ;;  %p2834_p0 = pneg %p2833_p13 }
  0x2d   : > { %2540 = vmatprep.subr.bf16.mxu0 %v2911_v1  ;;  %2580 = vmatprep.subr.bf16.mxu1 %v2911_v1 }
  0x2e   : > { %p2841_p5 = pnand %p2840_p3, %p2834_p0 }
  0x2f   : > { %2537 = vmatmul.mubr.msk.bf16.vlgmr.msra.gmra.mrb[4].mxu0 %vm674_vm1, %v616_v8  ;;  %2569 = vmatmul.mubr.msk.bf16.vlgmr.msra.gmra.mrb[4].mxu1 %vm674_vm1, %v3118_v12 }
  0x30   : > { %2541 = vmatpush3.bf16.msra.mxu0 %v2785_v13  ;;  %2581 = vmatpush3.bf16.msra.mxu1 %v2786_v14 }
  0x31   : > { %2542 = vmatprep.subr.bf16.mxu0 %v2911_v1  ;;  %2582 = vmatprep.subr.bf16.mxu1 %v2911_v1 }
  0x32   : > { %2544 = vmatprep.mubr.msk.bf16.mxu0 %vm2912_vm0, %v2911_v1  ;;  %2584 = vmatprep.mubr.msk.bf16.mxu1 %vm2912_vm0, %v2911_v1 }
  0x34   : > { %2543 = vmatpush3.bf16.msra.mxu0 %v2787_v15  ;;  %2583 = vmatpush3.bf16.msra.mxu1 %v2788_v16 }
  0x35   : > { %2556 = vmatprep.subr.bf16.mxu0 %v2911_v1  ;;  %2596 = vmatprep.subr.bf16.mxu1 %v2911_v1 }
  0x37   : > { %2545 = vmatmul.mubr.msk.bf16.vlgmr.msra.gmra.mrb[8].mxu0 %vm674_vm1, %v616_v8  ;;  %2585 = vmatmul.mubr.msk.bf16.vlgmr.msra.gmra.mrb[8].mxu1 %vm674_vm1, %v3118_v12 }
  0x38   : > { %2557 = vmatpush3.bf16.msra.mxu0 %v2789_v17  ;;  %2560 = vmatprep.mubr.msk.bf16.mxu0 %vm2912_vm0, %v2911_v1 }
  0x39   : > { %2558 = vmatprep.subr.bf16.mxu0 %v2911_v1  ;;  %2597 = vmatpush3.bf16.msra.mxu1 %v2793_v18 }
  0x3a   : > { %2598 = vmatprep.subr.bf16.mxu1 %v2911_v1  ;;  %2600 = vmatprep.mubr.msk.bf16.mxu1 %vm2912_vm0, %v2911_v1 }
  0x3c   : > { %2559 = vmatpush3.bf16.msra.mxu0 %v2790_v19 }
  0x3d   : > { %2572 = vmatprep.subr.bf16.mxu0 %v2911_v1  ;;  %2599 = vmatpush3.bf16.msra.mxu1 %v2794_v20 }
  0x3e   : > { %2612 = vmatprep.subr.bf16.mxu1 %v2911_v1 }
  0x3f   : > { %2561 = vmatmul.mubr.msk.bf16.vlgmr.msra.gmra.mrb[12].mxu0 %vm674_vm1, %v3118_v12 }
  0x40   : > { %2573 = vmatpush3.bf16.msra.mxu0 %v2791_v21  ;;  %2576 = vmatprep.mubr.msk.bf16.mxu0 %vm2912_vm0, %v2911_v1 }
  0x41   : > { %2574 = vmatprep.subr.bf16.mxu0 %v2911_v1  ;;  %2601 = vmatmul.mubr.msk.bf16.vlgmr.msra.gmra.mrb[12].mxu1 %vm674_vm1, %v3118_v12 }
  0x42   : > { %2616 = vmatprep.mubr.msk.bf16.mxu1 %vm2912_vm0, %v2911_v1  ;;  %2613 = vmatpush3.bf16.msra.mxu1 %v2795_v23 }
  0x43   : > { %2614 = vmatprep.subr.bf16.mxu1 %v2911_v1 }
  0x44   : > { %2575 = vmatpush3.bf16.msra.mxu0 %v2792_v22 }
  0x45   : > { %2588 = vmatprep.subr.bf16.mxu0 %v2911_v1 }
  0x46   : > { %2615 = vmatpush3.bf16.msra.mxu1 %v2796_v24  ;;  %v2388_v24 = vld [vmem:[%s3467_s5 + $0x2] ss:$0 sm:$0xff] }
  0x47   : > { %2577 = vmatmul.mubr.msk.bf16.vlgmr.msra.gmra.mrb[16].mxu0 %vm674_vm1, %v3118_v12  ;;  %2626 = vmatprep.subr.bf16.mxu1 %v2911_v1 }
  0x48   : > { %2592 = vmatprep.mubr.msk.bf16.mxu0 %vm2912_vm0, %v2911_v1  ;;  %2589 = vmatpush3.bf16.msra.mxu0 %v2797_v25 }
  0x49   : > { %2590 = vmatprep.subr.bf16.mxu0 %v2911_v1  ;;  %2617 = vmatmul.mubr.msk.bf16.vlgmr.msra.gmra.mrb[16].mxu1 %vm674_vm1, %v3118_v12 }
  0x4a   : > { %2628 = vmatprep.mubr.msk.bf16.mxu1 %vm2912_vm0, %v2911_v1 }
  0x4c   : > { %2591 = vmatpush3.bf16.msra.mxu0 %v2798_v26 }
  0x4d   : > { %2604 = vmatprep.subr.bf16.mxu0 %v2911_v1 }
  0x4f   : > { %2593 = vmatmul.mubr.msk.bf16.vlgmr.msra.gmra.mrb[20].mxu0 %vm674_vm1, %v3118_v12 }
  0x50   : > { %2608 = vmatprep.mubr.msk.bf16.mxu0 %vm2912_vm0, %v2911_v1  ;;  %2605 = vmatpush3.bf16.msra.mxu0 %v2799_v27  ;;  %v2372_v27 = vld [vmem:[%s3508_s3 + $0x2] ss:$0 sm:$0xff]  ;;  %s3414_s3 = scalar_lea.hbm %s3509_s22, %s2449_s27 }
  0x51   : > { %2606 = vmatprep.subr.bf16.mxu0 %v2911_v1 }
  0x54   : > { %2607 = vmatpush3.bf16.msra.mxu0 %v2800_v28 }
  0x55   : > { %2620 = vmatprep.subr.bf16.mxu0 %v2911_v1 }
  0x57   : > { %2609 = vmatmul.mubr.msk.bf16.vlgmr.msra.gmra.mrb[24].mxu0 %vm674_vm1, %v3118_v12 }
  0x58   : > { %2622 = vmatprep.mubr.msk.bf16.mxu0 %vm2912_vm0, %v2911_v1 }
  0xfa   : > { %v712_v29 = vpop.f32.mrb[0].mxu0  ;;  %v868_v30 = vpop.f32.mrb[0].mxu1 }
  0xfb   : > { %v2530_v31 = vpop.f32.mrb[1].mxu0  ;;  %v2554_v32 = vpop.f32.mrb[1].mxu1  ;;  %v869_v61 = vadd.f32 %v2373_v53, %v868_v30  ;;  %v713_v14 = vadd.f32 %v2370_v7, %v712_v29 }
  0xfc   : > { %v715_v33 = vpop.f32.mrb[2].mxu0  ;;  %v871_v34 = vpop.f32.mrb[2].mxu1 }
  0xfd   : > { %v2531_v35 = vpop.f32.mrb[3].mxu0  ;;  %v2555_v36 = vpop.f32.mrb[3].mxu1  ;;  %v1384_v5 = vmul.f32 0.35355338, %v869_v61  ;;  %v1381_v25 = vmul.f32 0.35355338, %v713_v14 }
  0xff   : > { %v1388_v15 = vpack.c.bf16 %v1384_v5, %v1384_v5  ;;  %v1385_v32 = vpack.c.bf16 %v1381_v25, %v1381_v25 }
 0x102   : > { %v764_v39 = vpop.f32.mrb[4].mxu0  ;;  %v1019_v40 = vpop.f32.mrb[4].mxu1 }
 0x103   : > { %v1020_v41 = vadd.f32 %v2387_v37, %v1019_v40  ;;  %v2538_v42 = vpop.f32.mrb[5].mxu0  ;;  %v2570_v43 = vpop.f32.mrb[5].mxu1  ;;  %v765_v46 = vadd.f32 %v2371_v38, %v764_v39 }
 0x104   : > { %v767_v44 = vpop.f32.mrb[6].mxu0  ;;  %v1022_v45 = vpop.f32.mrb[6].mxu1  ;;  %v2402_v43 = vld [vmem:[%s3469_s7] ss:$0 sm:$0xff] }
 0x105   : > { %v1390_v47 = vpack.c.bf16 %v1020_v41, %v1020_v41  ;;  %v2539_v48 = vpop.f32.mrb[7].mxu0  ;;  %v2571_v49 = vpop.f32.mrb[7].mxu1  ;;  %v1382_v52 = vmul.f32 0.35355338, %v765_v46 }
 0x107   : > { %v1448_v50 = vsel %vm1397_vm2, %v1390_v47, 0  ;;  %v1386_v62 = vpack.c.bf16 %v1382_v52, %v1382_v52 }
 0x108   : > { %2627 = vmatpush3.bf16.xpose.msra.mxu1 %v1448_v50 }
 0x109   : > { %2638 = vmatprep.subr.bf16.mxu1 %v2911_v1 }
 0x10a   : > { %v816_v54 = vpop.f32.mrb[8].mxu0  ;;  %v1123_v55 = vpop.f32.mrb[8].mxu1 }
 0x10b   : > { %v1124_v56 = vadd.f32 %v2389_v51, %v1123_v55  ;;  %v2546_v57 = vpop.f32.mrb[9].mxu0  ;;  %v2586_v58 = vpop.f32.mrb[9].mxu1  ;;  %v817_v33 = vadd.f32 %v2372_v27, %v816_v54 }
 0x10c   : > { %v819_v59 = vpop.f32.mrb[10].mxu0  ;;  %v1126_v60 = vpop.f32.mrb[10].mxu1 }
 0x10d   : > { %v1392_v63 = vpack.c.bf16 %v1124_v56, %v1124_v56  ;;  %v2547_v0 = vpop.f32.mrb[11].mxu0  ;;  %v2587_v2 = vpop.f32.mrb[11].mxu1  ;;  %v1383_v37 = vmul.f32 0.35355338, %v817_v33 }
 0x10f   : > { %v1540_v3 = vsel %vm1397_vm2, %v1392_v63, 0  ;;  %2629 = vmatmul.mubr.msk.bf16.vlgmr.msra.gmra.mrb[20].mxu1 %vm1397_vm2, %v1386_v62  ;;  %v1387_v38 = vpack.c.bf16 %v1383_v37, %v1383_v37 }
 0x110   : > { %2639 = vmatpush3.bf16.xpose.msra.mxu1 %v1540_v3  ;;  %2640 = vmatprep.mubr.msk.bf16.mxu1 %vm2912_vm0, %v2911_v1 }
 0x111   : > { %2650 = vmatprep.subr.bf16.mxu1 %v2911_v1 }
 0x112   : > { %v967_v8 = vpop.f32.mrb[12].mxu0 }
 0x113   : > { %v968_v10 = vadd.f32 %v2386_v4, %v967_v8  ;;  %v2562_v11 = vpop.f32.mrb[13].mxu0 }
 0x114   : > { %v970_v12 = vpop.f32.mrb[14].mxu0  ;;  %v1271_v13 = vpop.f32.mrb[12].mxu1 }
 0x115   : > { %v1389_v16 = vpack.c.bf16 %v968_v10, %v968_v10  ;;  %v2563_v17 = vpop.f32.mrb[15].mxu0  ;;  %v1272_v18 = vadd.f32 %v2403_v9, %v1271_v13  ;;  %v2602_v19 = vpop.f32.mrb[13].mxu1 }
 0x116   : > { %v1274_v20 = vpop.f32.mrb[14].mxu1 }
 0x117   : > { %v1402_v21 = vsel %vm1397_vm2, %v1389_v16, 0  ;;  %2641 = vmatmul.mubr.msk.bf16.vlgmr.msra.gmra.mrb[24].mxu1 %vm1397_vm2, %v1388_v15  ;;  %v1394_v22 = vpack.c.bf16 %v1272_v18, %v1272_v18  ;;  %v2603_v23 = vpop.f32.mrb[15].mxu1  ;;  %v2404_v18 = vld [vmem:[%s3469_s7 + $0x2] ss:$0 sm:$0xff] }
 0x118   : > { %2621 = vmatpush3.bf16.xpose.msra.mxu0 %v1402_v21  ;;  %2652 = vmatprep.mubr.msk.bf16.mxu1 %vm2912_vm0, %v2911_v1  ;;  %v2405_v23 = vld [vmem:[%s3469_s7 + $0x3] ss:$0 sm:$0xff] }
 0x119   : > { %2632 = vmatprep.subr.bf16.mxu0 %v2911_v1  ;;  %v1673_v26 = vsel %vm1625_vm3, %v1394_v22, 0 }
 0x11a   : > { %v1071_v28 = vpop.f32.mrb[16].mxu0  ;;  %2651 = vmatpush3.bf16.msra.mxu1 %v1673_v26 }
 0x11b   : > { %v1072_v29 = vadd.f32 %v2388_v24, %v1071_v28  ;;  %v2578_v30 = vpop.f32.mrb[17].mxu0  ;;  %2662 = vmatprep.subr.bf16.mxu1 %v2911_v1 }
 0x11c   : > { %v1074_v31 = vpop.f32.mrb[18].mxu0  ;;  %v1375_v39 = vpop.f32.mrb[16].mxu1 }
 0x11d   : > { %v1391_v34 = vpack.c.bf16 %v1072_v29, %v1072_v29  ;;  %v2579_v35 = vpop.f32.mrb[19].mxu0  ;;  %v2618_v40 = vpop.f32.mrb[17].mxu1  ;;  %v1376_v27 = vadd.f32 %v2405_v23, %v1375_v39 }
 0x11e   : > { %v1378_v41 = vpop.f32.mrb[18].mxu1 }
 0x11f   : > { %v1494_v36 = vsel %vm1397_vm2, %v1391_v34, 0  ;;  %2623 = vmatmul.mubr.msk.bf16.vlgmr.msra.gmra.mrb[28].mxu0 %vm1397_vm2, %v1385_v32  ;;  %v2619_v42 = vpop.f32.mrb[19].mxu1  ;;  %v1396_v33 = vpack.c.bf16 %v1376_v27, %v1376_v27 }
 0x120   : > { %2633 = vmatpush3.bf16.xpose.msra.mxu0 %v1494_v36  ;;  %2634 = vmatprep.mubr.msk.bf16.mxu0 %vm2912_vm0, %v2911_v1 }
 0x121   : > { %2644 = vmatprep.subr.bf16.mxu0 %v2911_v1 }
 0x122   : > { %v1219_v44 = vpop.f32.mrb[20].mxu0 }
 0x123   : > { %v1220_v45 = vadd.f32 %v2402_v43, %v1219_v44  ;;  %v2594_v46 = vpop.f32.mrb[21].mxu0 }
 0x124   : > { %v1222_v47 = vpop.f32.mrb[22].mxu0 }
 0x125   : > { %v1393_v48 = vpack.c.bf16 %v1220_v45, %v1220_v45  ;;  %v2595_v49 = vpop.f32.mrb[23].mxu0  ;;  %v1819_v45 = vld [vmem:[%s3470_s8] sm:$0xf]  ;;  %v1820_v47 = vld [vmem:[%s3470_s8 + $0x4] sm:$0xf] }
 0x126   : > { %v1827_v46 = vsel %vm1625_vm3, %v1819_v45, 0 }
 0x127   : > { %2635 = vmatmul.mubr.msk.bf16.vlgmr.msra.gmra.mrb[32].mxu0 %vm1397_vm2, %v1387_v38  ;;  %v1627_v50 = vsel %vm1625_vm3, %v1393_v48, 0  ;;  %v1765_v38 = vsel %vm1625_vm3, %v1396_v33, 0  ;;  %v1873_v48 = vsel %vm1625_vm3, %v1820_v47, 0 }
 0x128   : > { %2646 = vmatprep.mubr.msk.bf16.mxu0 %vm2912_vm0, %v2911_v1  ;;  %2645 = vmatpush3.bf16.msra.mxu0 %v1627_v50 }
 0x129   : > { %2656 = vmatprep.subr.bf16.mxu0 %v2911_v1 }
 0x12a   : > { %v1323_v51 = vpop.f32.mrb[24].mxu0 }
 0x12b   : > { %v2610_v52 = vpop.f32.mrb[25].mxu0  ;;  %v1324_v22 = vadd.f32 %v2404_v18, %v1323_v51 }
 0x12c   : > { %v1326_v53 = vpop.f32.mrb[26].mxu0 }
 0x12d   : > { %v2611_v54 = vpop.f32.mrb[27].mxu0  ;;  %v1395_v28 = vpack.c.bf16 %v1324_v22, %v1324_v22 }
 0x12f   : > { %v1719_v34 = vsel %vm1625_vm3, %v1395_v28, 0 }
 0x1e2   : > { %v1484_v55 = vpop.f32.mrb[20].mxu1 }
 0x1e3   : > { %v2630_v56 = vpop.f32.mrb[21].mxu1  ;;  %v1585_v5 = vsel %vm1397_vm2, %v1484_v55, -inf }
 0x1e4   : > { %v1487_v57 = vpop.f32.mrb[22].mxu1 }
 0x1e5   : > { %v2631_v58 = vpop.f32.mrb[23].mxu1 }
 0x1ea   : > { %v1576_v59 = vpop.f32.mrb[24].mxu1 }
 0x1eb   : > { %v2642_v60 = vpop.f32.mrb[25].mxu1  ;;  %v1591_v12 = vsel %vm1397_vm2, %v1576_v59, -inf }
 0x1ec   : > { %v1579_v61 = vpop.f32.mrb[26].mxu1 }
 0x1ed   : > { %v2643_v62 = vpop.f32.mrb[27].mxu1 }
 0x1f2   : > { %v1438_v63 = vpop.f32.mrb[28].mxu0 }
 0x1f3   : > { %v2624_v0 = vpop.f32.mrb[29].mxu0  ;;  %v1582_v2 = vsel %vm1397_vm2, %v1438_v63, -inf }
 0x1f4   : > { %1583 = vmax.xlane.f32.xlu0 %v1582_v2  ;;  %v1441_v3 = vpop.f32.mrb[30].mxu0  ;;  %v1822_v0 = vld [vmem:[%s3470_s8 + $0xc] sm:$0xf] }
 0x1f5   : > { %v2625_v4 = vpop.f32.mrb[31].mxu0 }
 0x1f8   : > { %1586 = vmax.xlane.f32.xlu0 %v1585_v5 }
 0x1fa   : > { %v1530_v7 = vpop.f32.mrb[32].mxu0 }
 0x1fb   : > { %v2636_v8 = vpop.f32.mrb[33].mxu0  ;;  %v1588_v9 = vsel %vm1397_vm2, %v1530_v7, -inf }
 0x1fc   : > { %1589 = vmax.xlane.f32.xlu1 %v1588_v9  ;;  %v1533_v10 = vpop.f32.mrb[34].mxu0  ;;  %v1965_v8 = vsel %vm1625_vm3, %v1822_v0, 0 }
 0x1fd   : > { %v2637_v11 = vpop.f32.mrb[35].mxu0 }
 0x200   : > { %1592 = vmax.xlane.f32.xlu1 %v1591_v12 }
 0x281   : > { %v1584_v13 = vpop.xlane.xlu0 %1583 }
 0x282   : > { %v1594_v14 = vsub.f32 %v1438_v63, %v1584_v13 }
 0x284   : > { %v1598_v15 = vmul.f32 1.442695, %v1594_v14 }
 0x285   : > { %v1587_v16 = vpop.xlane.xlu0 %1586 }
 0x286   : > { %2811 = vpow2.f32 %v1598_v15  ;;  %v1595_v17 = vsub.f32 %v1484_v55, %v1587_v16  ;;  %v1821_v55 = vld [vmem:[%s3470_s8 + $0x8] sm:$0xf] }
 0x287   : > { %v1919_v61 = vsel %vm1625_vm3, %v1821_v55, 0  ;;  %v2801_v55 = vld [vmem:[%s3472_s10] sm:$0xff]  }
 0x288   : > { %v1600_v19 = vmul.f32 1.442695, %v1595_v17 }
 0x289   : > { %v1590_v20 = vpop.xlane.xlu1 %1589 }
 0x28a   : > { %2813 = vpow2.f32 %v1600_v19  ;;  %v1596_v21 = vsub.f32 %v1530_v7, %v1590_v20 }
 0x28c   : > { %v1602_v24 = vmul.f32 1.442695, %v1596_v21 }
 0x28d   : > { %v1593_v25 = vpop.xlane.xlu1 %1592 }
 0x28e   : > { %2815 = vpow2.f32 %v1602_v24  ;;  %v1597_v26 = vsub.f32 %v1576_v59, %v1593_v25 }
 0x290   : > { %v2812_v29 = vpop.eup %2811  ;;  %v1604_v30 = vmul.f32 1.442695, %v1597_v26 }
 0x291   : > { %v1606_v31 = vsel %vm1397_vm2, %v2812_v29, 0.0  ;;  %v1618_v32 = vpack.c.bf16 %v2812_v29, %v2812_v29 }
 0x292   : > { %2817 = vpow2.f32 %v1604_v30  ;;  %1607 = vadd.xlane.f32.xlu0 %v1606_v31 }
 0x293   : > { %2647 = vmatmul.mubr.msk.bf16.vlgmr.msra.gmra.mrb[36].mxu0 %vm1397_vm2, %v1618_v32 }
 0x294   : > { %v2814_v35 = vpop.eup %2813  ;;  %2657 = vmatpush3.bf16.msra.mxu0 %v1719_v34  ;;  %2658 = vmatprep.mubr.msk.bf16.mxu0 %vm2912_vm0, %v2911_v1 }
 0x295   : > { %v1609_v36 = vsel %vm1397_vm2, %v2814_v35, 0.0  ;;  %v1619_v37 = vpack.c.bf16 %v2814_v35, %v2814_v35  ;;  %2668 = vmatprep.subr.bf16.mxu0 %v2911_v1 }
 0x296   : > { %1610 = vadd.xlane.f32.xlu1 %v1609_v36 }
 0x297   : > { %2653 = vmatmul.mubr.msk.bf16.vlgmr.msra.gmra.mrb[28].mxu1 %vm1397_vm2, %v1619_v37 }
 0x298   : > { %v2816_v39 = vpop.eup %2815  ;;  %2663 = vmatpush3.bf16.msra.mxu1 %v1765_v38  ;;  %2664 = vmatprep.mubr.msk.bf16.mxu1 %vm2912_vm0, %v2911_v1 }
 0x299   : > { %v1612_v40 = vsel %vm1397_vm2, %v2816_v39, 0.0  ;;  %v1620_v41 = vpack.c.bf16 %v2816_v39, %v2816_v39  ;;  %2674 = vmatprep.subr.bf16.mxu1 %v2911_v1 }
 0x29a   : > { %1613 = vadd.xlane.f32.xlu0 %v1612_v40 }
 0x29b   : > { %2659 = vmatmul.mubr.msk.bf16.vlgmr.msra.gmra.mrb[40].mxu0 %vm1397_vm2, %v1620_v41 }
 0x29c   : > { %v2818_v42 = vpop.eup %2817  ;;  %2670 = vmatprep.mubr.msk.bf16.mxu0 %vm2912_vm0, %v2911_v1  ;;  %2669 = vmatpush3.bf16.msra.mxu0 %v1827_v46 }
 0x29d   : > { %v1615_v43 = vsel %vm1397_vm2, %v2818_v42, 0.0  ;;  %v1621_v44 = vpack.c.bf16 %v2818_v42, %v2818_v42  ;;  %2680 = vmatprep.subr.bf16.mxu0 %v2911_v1  ;;  %v2430_v42 = vld [vmem:[%s3471_s9] ss:$0 sm:$0xff] }
 0x29e   : > { %1616 = vadd.xlane.f32.xlu1 %v1615_v43 }
 0x29f   : > { %2665 = vmatmul.mubr.msk.bf16.vlgmr.msra.gmra.mrb[32].mxu1 %vm1397_vm2, %v1621_v44 }
 0x2a0   : > { %2676 = vmatprep.mubr.msk.bf16.mxu1 %vm2912_vm0, %v2911_v1  ;;  %2675 = vmatpush3.bf16.msra.mxu1 %v1873_v48 }
 0x2a1   : > { %2686 = vmatprep.subr.bf16.mxu1 %v2911_v1 }
 0x31f   : > { %v1608_v49 = vpop.xlane.xlu0 %1607 }
 0x320   : > { %2819 = vrcp.f32 %v1608_v49 }
 0x323   : > { %v1611_v50 = vpop.xlane.xlu1 %1610 }
 0x324   : > { %2821 = vrcp.f32 %v1611_v50 }
 0x327   : > { %v1614_v51 = vpop.xlane.xlu0 %1613 }
 0x328   : > { %2823 = vrcp.f32 %v1614_v51 }
 0x32a   : > { %v2820_v53 = vpop.eup %2819 }
 0x32b   : > { %v1617_v52 = vpop.xlane.xlu1 %1616 }
 0x32c   : > { %2825 = vrcp.f32 %v1617_v52 }
 0x32e   : > { %v2822_v62 = vpop.eup %2821 }
 0x332   : > { %v2824_v9 = vpop.eup %2823 }
 0x336   : > { %v2826_v16 = vpop.eup %2825 }
 0x366   : > { %v1663_v54 = vpop.f32.mrb[36].mxu0 }
 0x367   : > { %v1811_v56 = vmul.f32 %v2820_v53, %v1663_v54  ;;  %v2648_v57 = vpop.f32.mrb[37].mxu0 }
 0x368   : > { %v1666_v58 = vpop.f32.mrb[38].mxu0  ;;  %v2804_v57 = vld [vmem:[%s3474_s12 + $0x8] sm:$0xff]  }
 0x369   : > { %v1815_v59 = vpack.c.bf16 %v1811_v56, %v1811_v56  ;;  %v2649_v60 = vpop.f32.mrb[39].mxu0  ;;  %v2802_v56 = vld [vmem:[%s3472_s10 + $0x8] sm:$0xff]   ;;  %v2805_v58 = vld [vmem:[%s3474_s12 + $0x10] sm:$0xff]  }
 0x36a   : > { %v1709_v63 = vpop.f32.mrb[28].mxu1  ;;  %v2807_v60 = vld [vmem:[%s3474_s12 + $0x20] sm:$0xff]  }
 0x36b   : > { %v1812_v2 = vmul.f32 %v2822_v62, %v1709_v63  ;;  %v2654_v3 = vpop.f32.mrb[29].mxu1  ;;  %2671 = vmatmul.mubr.msk.bf16.vlgmr.msra.gmra.mrb[44].mxu0 %vm1397_vm2, %v1815_v59  ;;  %v2806_v59 = vld [vmem:[%s3474_s12 + $0x18] sm:$0xff]  }
 0x36c   : > { %v1712_v4 = vpop.f32.mrb[30].mxu1  ;;  %2681 = vmatpush3.bf16.msra.mxu0 %v1919_v61  ;;  %2682 = vmatprep.mubr.msk.bf16.mxu0 %vm2912_vm0, %v2911_v1  ;;  %v2808_v61 = vld [vmem:[%s3474_s12 + $0x28] sm:$0xff]   ;;  %v2431_v3 = vld [vmem:[%s3476_s14] ss:$0 sm:$0xff] }
 0x36d   : > { %v1816_v5 = vpack.c.bf16 %v1812_v2, %v1812_v2  ;;  %v2655_v7 = vpop.f32.mrb[31].mxu1  ;;  %2692 = vmatprep.subr.bf16.mxu0 %v2911_v1 }
 0x36e   : > { %v1755_v10 = vpop.f32.mrb[40].mxu0 }
 0x36f   : > { %v1813_v11 = vmul.f32 %v2824_v9, %v1755_v10  ;;  %v2660_v12 = vpop.f32.mrb[41].mxu0  ;;  %2677 = vmatmul.mubr.msk.bf16.vlgmr.msra.gmra.mrb[36].mxu1 %vm1397_vm2, %v1816_v5  ;;  %v2432_v5 = vld [vmem:[%s3477_s15] ss:$0 sm:$0xff]  ;;  %v2809_v10 = vld [vmem:[%s3474_s12 + $0x30] sm:$0xff]  }
 0x370   : > { %v1758_v13 = vpop.f32.mrb[42].mxu0  ;;  %2687 = vmatpush3.bf16.msra.mxu1 %v1965_v8  ;;  %2688 = vmatprep.mubr.msk.bf16.mxu1 %vm2912_vm0, %v2911_v1  ;;  %v2433_v12 = vld [vmem:[%s3473_s11] ss:$0 sm:$0xff] }
 0x371   : > { %v1817_v14 = vpack.c.bf16 %v1813_v11, %v1813_v11  ;;  %v2661_v15 = vpop.f32.mrb[43].mxu0  ;;  %2700 = vmatprep.subr.bf16.mxu1 %v2911_v1  ;;  %v2810_v11 = vld [vmem:[%s3474_s12 + $0x38] sm:$0xff]  }
 0x372   : > { %v1801_v17 = vpop.f32.mrb[32].mxu1 }
 0x373   : > { %v1814_v18 = vmul.f32 %v2826_v16, %v1801_v17  ;;  %v2666_v19 = vpop.f32.mrb[33].mxu1  ;;  %2683 = vmatmul.mubr.msk.bf16.vlgmr.msra.gmra.mrb[48].mxu0 %vm1397_vm2, %v1817_v14 }
 0x374   : > { %v1804_v20 = vpop.f32.mrb[34].mxu1  ;;  %2696 = vmatprep.mubr.msk.bf16.mxu0 %vm2912_vm0, %v2911_v1  ;;  %2693 = vmatpush3.bf16.msra.mxu0 %v2801_v55 }
 0x375   : > { %v1818_v21 = vpack.c.bf16 %v1814_v18, %v1814_v18  ;;  %v2667_v22 = vpop.f32.mrb[35].mxu1  ;;  %2694 = vmatprep.subr.bf16.mxu0 %v2911_v1 }
 0x377   : > { %2689 = vmatmul.mubr.msk.bf16.vlgmr.msra.gmra.mrb[40].mxu1 %vm1397_vm2, %v1818_v21 }
 0x378   : > { %2716 = vmatprep.mubr.msk.bf16.mxu1 %vm2912_vm0, %v2911_v1  ;;  %2695 = vmatpush3.bf16.msra.mxu0 %v2802_v56 }
 0x43e   : > { %v1863_v23 = vpop.f32.mrb[44].mxu0 }
 0x43f   : > { %v2672_v24 = vpop.f32.mrb[45].mxu0  ;;  %v2007_v28 = vsel %vm674_vm1, %v1863_v23, 0.0 }
 0x440   : > { %v1866_v25 = vpop.f32.mrb[46].mxu0 }
 0x441   : > { %v2673_v26 = vpop.f32.mrb[47].mxu0 }
 0x442   : > { %v1909_v27 = vpop.f32.mrb[36].mxu1 }
 0x443   : > { %v2008_v29 = vsel %vm674_vm1, %v1909_v27, 0.0  ;;  %v2678_v30 = vpop.f32.mrb[37].mxu1 }
 0x444   : > { %v2009_v31 = vadd.f32 %v2008_v29, %v2007_v28  ;;  %v1912_v32 = vpop.f32.mrb[38].mxu1 }
 0x445   : > { %v2679_v33 = vpop.f32.mrb[39].mxu1 }
 0x446   : > { %v1955_v34 = vpop.f32.mrb[48].mxu0 }
 0x447   : > { %v2010_v35 = vsel %vm674_vm1, %v1955_v34, 0.0  ;;  %v2684_v36 = vpop.f32.mrb[49].mxu0 }
 0x448   : > { %v2011_v37 = vadd.f32 %v2010_v35, %v2009_v31  ;;  %v1958_v38 = vpop.f32.mrb[50].mxu0  ;;  %v2446_v36 = vld [vmem:[%s3478_s16] ss:$0 sm:$0xff] }
 0x449   : > { %v2685_v39 = vpop.f32.mrb[51].mxu0  ;;  %v2447_v38 = vld [vmem:[%s3479_s17] ss:$0 sm:$0xff] }
 0x44a   : > { %v2001_v40 = vpop.f32.mrb[40].mxu1 }
 0x44b   : > { %v2012_v41 = vsel %vm674_vm1, %v2001_v40, 0.0  ;;  %v2690_v43 = vpop.f32.mrb[41].mxu1 }
 0x44c   : > { %v2013_v44 = vadd.f32 %v2012_v41, %v2011_v37  ;;  %v2004_v45 = vpop.f32.mrb[42].mxu1 }
 0x44d   : > { %v2691_v46 = vpop.f32.mrb[43].mxu1 }
 0x44e   : > { %v2021_v47 = vadd.f32 %v2430_v42, %v2013_v44 }
 0x450   : > { %v2022_v48 = vadd.f32 %v2021_v47, %v3093_v6  ;;  %v2803_v6 = vld [vmem:[%s3474_s12] sm:$0xff]  }
 0x451   : > { %2701 = vmatpush3.bf16.msra.mxu1 %v2803_v6 }
 0x452   : > { %v2025_v49 = vsel %vm674_vm1, %v2022_v48, 0.0  ;;  %2702 = vmatprep.subr.bf16.mxu1 %v2911_v1 }
 0x453   : > { %2026 = vadd.xlane.f32.xlu0 %v2025_v49 }
 0x455   : > { %2703 = vmatpush3.bf16.msra.mxu1 %v2804_v57 }
 0x456   : > { %2704 = vmatprep.subr.bf16.mxu1 %v2911_v1 }
 0x459   : > { %2705 = vmatpush3.bf16.msra.mxu1 %v2805_v58 }
 0x45a   : > { %2706 = vmatprep.subr.bf16.mxu1 %v2911_v1 }
 0x45d   : > { %2707 = vmatpush3.bf16.msra.mxu1 %v2806_v59 }
 0x45e   : > { %2708 = vmatprep.subr.bf16.mxu1 %v2911_v1 }
 0x461   : > { %2709 = vmatpush3.bf16.msra.mxu1 %v2807_v60 }
 0x462   : > { %2710 = vmatprep.subr.bf16.mxu1 %v2911_v1 }
 0x465   : > { %2711 = vmatpush3.bf16.msra.mxu1 %v2808_v61 }
 0x466   : > { %2712 = vmatprep.subr.bf16.mxu1 %v2911_v1 }
 0x469   : > { %2713 = vmatpush3.bf16.msra.mxu1 %v2809_v10 }
 0x46a   : > { %2714 = vmatprep.subr.bf16.mxu1 %v2911_v1  ;;  %v2437_v1 = vld [vmem:[%s3475_s13] ss:$0 sm:$0xff] }
 0x46d   : > { %2715 = vmatpush3.bf16.msra.mxu1 %v2810_v11 }
 0x4e0   : > { %v2027_v50 = vpop.xlane.xlu0 %2026 }
 0x4e1   : > { %v2029_v51 = vmul.f32 0.03125, %v2027_v50 }
 0x4e3   : > { %v2030_v52 = vsub.f32 %v2022_v48, %v2029_v51 }
 0x4e5   : > { %v2031_v53 = vmul.f32 %v2030_v52, %v2030_v52 }
 0x4e7   : > { %v2032_v54 = vsel %vm674_vm1, %v2031_v53, 0.0 }
 0x4e8   : > { %2033 = vadd.xlane.f32.xlu1 %v2032_v54 }
 0x575   : > { %v2034_v62 = vpop.xlane.xlu1 %2033 }
 0x576   : > { %v2035_v63 = vmul.f32 0.03125, %v2034_v62 }
 0x578   : > { %v2036_v0 = vadd.f32 1e-05, %v2035_v63 }
 0x57a   : > { %2827 = vrsqrt.f32 %v2036_v0 }
 0x584   : > { %v2828_v2 = vpop.eup %2827 }
 0x585   : > { %v2038_v4 = vmul.f32 %v2828_v2, %v2030_v52 }
 0x587   : > { %v2045_v7 = vmul.f32 %v2431_v3, %v2038_v4 }
 0x589   : > { %v2052_v8 = vadd.f32 %v2432_v5, %v2045_v7 }
 0x58b   : > { %v2053_v9 = vpack.c.bf16 %v2052_v8, %v2052_v8 }
 0x58d   : > { %2697 = vmatmul.mubr.msk.bf16.vlgmr.msra.gmra.mrb[52].mxu0 %vm674_vm1, %v2053_v9 }
 0x660   : > { %v2114_v13 = vpop.f32.mrb[52].mxu0 }
 0x661   : > { %v2115_v14 = vadd.f32 %v2433_v12, %v2114_v13  ;;  %v2698_v15 = vpop.f32.mrb[53].mxu0 }
 0x662   : > { %v2117_v16 = vpop.f32.mrb[54].mxu0 }
 0x663   : > { %v2120_v17 = vmax.f32 %v2115_v14, 0.0  ;;  %v2699_v18 = vpop.f32.mrb[55].mxu0 }
 0x665   : > { %v2121_v19 = vpack.c.bf16 %v2120_v17, %v2120_v17 }
 0x667   : > { %2717 = vmatmul.mubr.bf16.vlgmr.msra.gmra.mrb[44].mxu1 %v2121_v19 }
 0x73a   : > { %v2227_v20 = vpop.f32.mrb[44].mxu1 }
 0x73b   : > { %v2228_v21 = vadd.f32 %v2437_v1, %v2227_v20  ;;  %v2718_v22 = vpop.f32.mrb[45].mxu1 }
 0x73c   : > { %v2230_v23 = vpop.f32.mrb[46].mxu1 }
 0x73d   : > { %v2719_v24 = vpop.f32.mrb[47].mxu1  ;;  %v2233_v25 = vadd.f32 %v2228_v21, %v2052_v8 }
 0x73f   : > { %v2236_v26 = vsel %vm674_vm1, %v2233_v25, 0.0 }
 0x740   : > { %2237 = vadd.xlane.f32.xlu0 %v2236_v26 }
 0x7cd   : > { %v2238_v27 = vpop.xlane.xlu0 %2237 }
 0x7ce   : > { %v2239_v28 = vmul.f32 0.03125, %v2238_v27 }
 0x7d0   : > { %v2240_v29 = vsub.f32 %v2233_v25, %v2239_v28 }
 0x7d2   : > { %v2241_v30 = vmul.f32 %v2240_v29, %v2240_v29 }
 0x7d4   : > { %v2242_v31 = vsel %vm674_vm1, %v2241_v30, 0.0 }
 0x7d5   : > { %2243 = vadd.xlane.f32.xlu1 %v2242_v31 }
 0x862   : > { %v2244_v32 = vpop.xlane.xlu1 %2243 }
 0x863   : > { %v2245_v33 = vmul.f32 0.03125, %v2244_v32 }
 0x865   : > { %v2246_v34 = vadd.f32 1e-05, %v2245_v33 }
 0x867   : > { %2829 = vrsqrt.f32 %v2246_v34 }
 0x871   : > { %v2830_v35 = vpop.eup %2829 }
 0x872   : > { %v2248_v37 = vmul.f32 %v2830_v35, %v2240_v29 }
 0x874   : > { %v2255_v39 = vmul.f32 %v2446_v36, %v2248_v37 }
 0x876   : > { %v2262_v40 = vadd.f32 %v2447_v38, %v2255_v39 }
 0x878   : > { %2263 = vst.msk [vmem:[%s601_s26] sm:$0xff] %vm674_vm1, %v2262_v40 }
 0x879   : > { %2844 = shalt.err (!%p2841_p5)
}
 0x87a   : > { %s2845_s29 = scalar_lea.hbm %s3414_s3, 128  ;;  %s2849_s26 = scalar_lea.hbm %s3509_s22, 256 }
 0x87b   : > { %p2846_p6 = scmp.ne.s32.totalorder %s3414_s3, %s2845_s29  ;;  %p2850_p10 = scmp.lt.u32.totalorder %s3414_s3, %s3509_s22 }
 0x87c   : > { %p2851_p11 = scmp.lt.u32.totalorder %s2849_s26, %s2845_s29  ;;  %p2853_p13 = scmp.lt.u32.totalorder %s2845_s29, %s3414_s3 }
 0x87d   : > { %p2847_p7 = pnand %p2846_p6, %p3049_p4 }
 0x87e   : > { %p2852_p12 = por %p2851_p11, %p2850_p10 }
 0x87f   : > { %p2848_p9 = pneg %p2847_p7 }
 0x880   : > { %p2854_p0 = por %p2853_p13, %p2852_p12 }
 0x882   : > { %p2855_p1 = pnand %p2854_p0, %p2848_p9 }
 0x884   : > { %2858 = shalt.err (!%p2855_p1)
}
 0x885   : > { %2720 = dma.vmem_to_hbm [thread:$0]  (%p3049_p4), %s3416_s1, 128, %s3414_s3, %s2265_s19  }
 0x886 PF: > { %s3510_s24 = sld [smem:[#allocation8_spill]]  ;;  %s3511_s30 = sld [smem:[#allocation5_spill]] }
 0x88c   : > { %p2726_p2 = scmp.ge.s32.totalorder %s3510_s24, 2  ;;  %s2291_s25 = sand.u32 1, %s3511_s30  }
 0x88d   : > { %s2292_s21 = scalar_lea.sflag [#allocation3], %s2291_s25 }
 0x88e   : > { %p2723_p3 = pnand %p2726_p2, %p3056_p8 }
 0x890   : > { %2884 = dma.done.wait (!%p2723_p3), %s2292_s21, 128  }
 0x891   : > { %2886 = vsyncadd (!%p2723_p3), %s2292_s21, 4294967168  ;;  %s31_s19 = sadd.s32 1, %s3510_s24   ;;  %s3513_s29 = sld [smem:[#allocation6_spill]] }
 0x892   : > { %p28_p5 = scmp.ge.s32.totalorder %s31_s19, 4   ;;  %s3514_s2 = sld [smem:[#allocation11_spill]] }
 0x893   : > { %s3515_s30 = sld [smem:[#allocation7_spill]]  ;;  %s3516_s0 = sld [smem:[#allocation9_spill]] }
 0x894   : > { %s3517_s27 = smov %s2893_s28  ;;  %30 = sbr.rel (!%p28_p5) target bundleno = 10 (0xa), region = 130 }
 0x897   : > { %s3518_s28 = smov %s3513_s29 }
 0x898   : > { %s3519_s29 = smov %s3514_s2 }
 0x89b   :  { %2297 = vsyncpa [#allocation3], 1 }
 0x89c   :  { %2299 = vsyncpa [#allocation3 + $0x1], 1 }

</bundles_post_ra>
